<compile_context>
chip_gen: v6e
topology: v6e:2x2x1
jax: 0.10.0
libtpu: 0.0.40
codegen_flags: <defaults>
</compile_context>

<pallas_src>
import functools

import jax
import jax.numpy as jnp
from jax.experimental import pallas as pl
from jax.experimental.pallas import tpu as pltpu


# --------------------------------------------------------------------------
# VMEM / tile-size helpers
# --------------------------------------------------------------------------
def _vmem_limit_bytes():
    try:
        cap = pltpu.get_tpu_info().vmem_capacity_bytes
    except Exception:
        cap = 128 * 1024 * 1024
    # Headroom for compiler-internal scratch / spills (v7x: 64 MiB physical
    # VMEM per TensorCore; v5e/v6e: 128 MiB).
    return min(int(cap * 3 // 4), 96 * 1024 * 1024)


def _tk_for(tb, C, HWp, x_itemsize, w_stream_itemsize, tile_budget):
    """Largest 128-multiple divisor of HWp that fits the per-step budget."""
    # Per 128 lanes of tk:
    #   x double buffer:                    2 * tb * C * x_itemsize
    #   streamed-w double buffer (0 if resident): 2 * C * w_stream_itemsize
    #   in-kernel f32 upcast + broadcast-product temporaries: ~2 * tb * C * 4
    per_lane = 128 * C * (2 * tb * x_itemsize + 2 * w_stream_itemsize + 8 * tb)
    max_lanes = max(1, tile_budget // per_lane)
    n_lanes = HWp // 128
    t = max(1, min(max_lanes, n_lanes))
    # tk must divide HWp exactly so no over-padding / ragged block is needed.
    # TODO(synk): for pathological (near-prime) lane counts this can land on a
    # small divisor; padding HWp a little further would trade bytes for fewer
    # grid steps.
    while n_lanes % t != 0:
        t -= 1
    return t * 128


def _choose_tiles(B, C, HWp, x_itemsize, w_stream_itemsize, tile_budget):
    """Pick (tb, tk): prefer nb >= 2 (both v7x TCs busy), then largest tb
    that still leaves tk >= 512 lanes."""
    # tb must be a multiple of 8 (output-block sublane rule) or the full B.
    cands = [t for t in (256, 128, 64, 32, 16, 8) if t <= B and B % t == 0]
    if not cands:
        cands = [B]
    multi = [t for t in cands if B // t >= 2]      # batch axis spans >= 2 blocks
    single = [t for t in cands if B // t < 2]
    for tb in multi + single:
        tk = _tk_for(tb, C, HWp, x_itemsize, w_stream_itemsize, tile_budget)
        if tk >= 512 or tk == HWp:
            return tb, tk
    tb = cands[-1]                                  # smallest tb -> largest tk
    return tb, _tk_for(tb, C, HWp, x_itemsize, w_stream_itemsize, tile_budget)


# --------------------------------------------------------------------------
# Kernel 1: one-shot row softmax of the gsp parameter (off the hot path)
# --------------------------------------------------------------------------
def _row_softmax_kernel(g_ref, w_ref):
    g = g_ref[...].astype(jnp.float32)               # (tc, HWp)
    m = jnp.max(g, axis=-1, keepdims=True)           # padded -inf is ignored
    e = jnp.exp(g - m)                                # -inf padding -> exactly 0
    s = jnp.sum(e, axis=-1, keepdims=True)
    w_ref[...] = e * pl.reciprocal(s, approx=False)


def _row_softmax(gsp_padded, vmem_limit):
    C, HWp = gsp_padded.shape
    tc = 8 if C % 8 == 0 else C
    g_item = jnp.dtype(gsp_padded.dtype).itemsize
    # Double-buffered in+out blocks plus in-kernel f32 temporaries.
    footprint = 2 * tc * HWp * (g_item + 4) + 2 * tc * HWp * 4
    if footprint > (vmem_limit * 3) // 4:
        # TODO(synk): off the hot path; a HW-tiled online-softmax Pallas kernel
        # would avoid this fallback for extremely large feature maps.
        return jax.nn.softmax(gsp_padded.astype(jnp.float32), axis=-1)
    return pl.pallas_call(
        _row_softmax_kernel,
        out_shape=jax.ShapeDtypeStruct((C, HWp), jnp.float32),
        grid=(C // tc,),
        in_specs=[pl.BlockSpec((tc, HWp), lambda i: (i, 0))],
        out_specs=pl.BlockSpec((tc, HWp), lambda i: (i, 0)),
        compiler_params=pltpu.CompilerParams(
            dimension_semantics=("parallel",),
            vmem_limit_bytes=vmem_limit),
        cost_estimate=pl.CostEstimate(
            flops=4 * C * HWp,
            transcendentals=C * HWp,
            bytes_accessed=C * HWp * (g_item + 4)),
    )(gsp_padded)


# --------------------------------------------------------------------------
# Kernel 2: streaming weighted spatial reduction (the hot, HBM-bound loop)
# --------------------------------------------------------------------------
def _weighted_pool_kernel(w_ref, x_ref, o_ref, acc_ref, *, tk, w_resident):
    k = pl.program_id(1)

    @pl.when(k == 0)
    def _():
        acc_ref[...] = jnp.zeros_like(acc_ref)

    if w_resident:
        # Whole (C, HWp) weight slab is VMEM-resident (constant index_map ->
        # fetched once); slice the current lane window dynamically.
        off = pl.multiple_of(k * tk, 128)
        w = w_ref[:, pl.ds(off, tk)]
    else:
        w = w_ref[...]                               # (C, tk), streamed per step

    # VPU multiply + XLU lane reduce on a (tb, C, tk) tile; f32 accumulate.
    x = x_ref[...].astype(jnp.float32)               # (tb, C, tk)
    w = w.astype(jnp.float32)
    acc_ref[...] += jnp.sum(x * w[None, :, :], axis=-1)

    @pl.when(k == pl.num_programs(1) - 1)
    def _():
        o_ref[...] = acc_ref[...].astype(o_ref.dtype)


def global_softmax_pool2d(x, gsp):
    """x: (B, C, H, W) NCHW; gsp: (C, H*W). Returns (B, C) in x.dtype."""
    B, C, H, W = x.shape
    HW = H * W
    assert gsp.shape == (C, HW)

    x_itemsize = jnp.dtype(x.dtype).itemsize
    vmem_limit = _vmem_limit_bytes()

    # --- spatial padding: only to the 128-lane boundary, and only if needed ---
    HWp = pl.cdiv(HW, 128) * 128
    x_flat = x.reshape(B, C, HW)
    if HWp != HW:
        # TODO(synk): the pad costs an extra read+write of x in XLA; a ragged
        # final k-block handled in-kernel would avoid it for misaligned HW.
        x_flat = jnp.pad(x_flat, ((0, 0), (0, 0), (0, HWp - HW)))
        gsp = jnp.pad(gsp, ((0, 0), (0, HWp - HW)),
                      constant_values=-jnp.inf)      # padded softmax weights == 0

    # --- hoisted, one-shot softmax of the parameter (tiny vs the x stream) ---
    w = _row_softmax(gsp, vmem_limit)                # (C, HWp) f32

    # --- weight residency: keep w in VMEM for the whole grid when it fits ---
    w_resident_bytes = 2 * C * HWp * 4               # (default double-buffered)
    w_resident = w_resident_bytes <= vmem_limit // 4
    if not w_resident and x_itemsize < 4:
        w = w.astype(x.dtype)                        # halve the re-streamed bytes
    w_stream_itemsize = 0 if w_resident else jnp.dtype(w.dtype).itemsize

    # --- tile sizing (budgets x double-buffers, streamed w, f32 temporaries) ---
    tile_budget = (vmem_limit * 3) // 4
    if w_resident:
        tile_budget -= w_resident_bytes
    tb, tk = _choose_tiles(B, C, HWp, x_itemsize, w_stream_itemsize, tile_budget)
    nb, nk = B // tb, HWp // tk

    if w_resident:
        w_spec = pl.BlockSpec((C, HWp), lambda b, k: (0, 0))   # fetched once
        w_bytes = C * HWp * 4
    else:
        w_spec = pl.BlockSpec((C, tk), lambda b, k: (0, k))    # re-streamed / b-tile
        w_bytes = nb * C * HWp * w_stream_itemsize

    x_bytes = B * C * HWp * x_itemsize
    o_bytes = B * C * x_itemsize

    kernel = functools.partial(_weighted_pool_kernel, tk=tk, w_resident=w_resident)

    # TODO(synk): for very small C the (tb, C) output stores are masked partial
    # stores; padding C to a lane-dense 128 multiple is not worth extra traffic
    # since the output is written only once per batch tile.
    return pl.pallas_call(
        kernel,
        out_shape=jax.ShapeDtypeStruct((B, C), x.dtype),
        grid_spec=pltpu.PrefetchScalarGridSpec(
            num_scalar_prefetch=0,
            grid=(nb, nk),
            in_specs=[
                w_spec,                                           # weights
                pl.BlockSpec((tb, C, tk), lambda b, k: (b, 0, k)),  # x stream
            ],
            out_specs=pl.BlockSpec((tb, C), lambda b, k: (b, 0)),
            scratch_shapes=[pltpu.VMEM((tb, C), jnp.float32)],
        ),
        compiler_params=pltpu.CompilerParams(
            dimension_semantics=("parallel", "arbitrary"),
            vmem_limit_bytes=vmem_limit),
        cost_estimate=pl.CostEstimate(
            flops=2 * B * C * HWp,
            transcendentals=0,
            bytes_accessed=x_bytes + w_bytes + o_bytes),
    )(w, x_flat)


# --------------------------------------------------------------------------
# Pure-JAX reference + self-test
# --------------------------------------------------------------------------
def _reference(x, gsp):
    B, C, H, W = x.shape
    x_flat = x.reshape(B, C, H * W).astype(jnp.float32)
    w = jax.nn.softmax(gsp.astype(jnp.float32), axis=-1)
    return jnp.sum(w[None] * x_flat, axis=-1).astype(x.dtype)


if __name__ == "__main__":
    key = jax.random.PRNGKey(0)
    kx, kg = jax.random.split(key)

    B, C, H, W = 2, 4, 16, 16
    x = jax.random.normal(kx, (B, C, H, W), dtype=jnp.float32)
    # deterministic parameter init (torch.randn equivalent)
    gsp = jax.random.normal(kg, (C, H * W), dtype=jnp.float32)

    out = jax.block_until_ready(global_softmax_pool2d(x, gsp))

    ref = _reference(x, gsp)
    assert out.shape == (B, C)
    assert jnp.allclose(out, ref, atol=1e-5, rtol=1e-5), "mismatch vs reference"

    print("KERNEL_OK")
</pallas_src>

<mosaic_0001>
module attributes {stable_mosaic.version = 11 : i64} {
  func.func @_row_softmax_kernel(%arg0: i32, %arg1: memref<4x256xf32, #tpu.memory_space<vmem>>, %arg2: memref<4x256xf32, #tpu.memory_space<vmem>>) attributes {dimension_semantics = [#tpu.dimension_semantics<parallel>], iteration_bounds = array<i64: 1>, scalar_prefetch = 0 : i64, scratch_operands = 0 : i64, tpu.core_type = #tpu.core_type<tc>, window_params = [{transform_indices = @transform_0, window_bounds = array<i64: 4, 256>}, {transform_indices = @transform_1, window_bounds = array<i64: 4, 256>}]} {
    %c0 = arith.constant 0 : index
    %c0_0 = arith.constant 0 : index
    %0 = vector.load %arg1[%c0, %c0_0] : memref<4x256xf32, #tpu.memory_space<vmem>>, vector<4x256xf32>
    %cst = arith.constant dense<0xFF800000> : vector<4xf32>
    %1 = vector.multi_reduction <maximumf>, %0, %cst [1] : vector<4x256xf32> to vector<4xf32>
    %2 = vector.shape_cast %1 : vector<4xf32> to vector<4x1xf32>
    %3 = vector.broadcast %2 : vector<4x1xf32> to vector<4x256xf32>
    %4 = arith.subf %0, %3 : vector<4x256xf32>
    %5 = math.exp %4 : vector<4x256xf32>
    %cst_1 = arith.constant dense<0.000000e+00> : vector<4xf32>
    %6 = vector.multi_reduction <add>, %5, %cst_1 [1] : vector<4x256xf32> to vector<4xf32>
    %7 = vector.shape_cast %6 : vector<4xf32> to vector<4x1xf32>
    %8 = tpu.reciprocal %7 : vector<4x1xf32> -> vector<4x1xf32>
    %9 = vector.broadcast %8 : vector<4x1xf32> to vector<4x256xf32>
    %10 = arith.mulf %5, %9 : vector<4x256xf32>
    %c0_2 = arith.constant 0 : index
    %c0_3 = arith.constant 0 : index
    %11 = vector.load %arg2[%c0_2, %c0_3] : memref<4x256xf32, #tpu.memory_space<vmem>>, vector<4x256xf32>
    tpu.vector_store %arg2[%c0_2, %c0_3], %10 {strides = array<i32>} : memref<4x256xf32, #tpu.memory_space<vmem>>, vector<4x256xf32>,
    return
  }
  func.func @transform_0(%arg0: i32) -> (i32, i32) {
    %c0_i32 = arith.constant 0 : i32
    %c0_i32_0 = arith.constant 0 : i32
    return %arg0, %c0_i32 : i32, i32
  }
  func.func @transform_1(%arg0: i32) -> (i32, i32) {
    %c0_i32 = arith.constant 0 : i32
    %c0_i32_0 = arith.constant 0 : i32
    return %arg0, %c0_i32 : i32, i32
  }
}

</mosaic_0001>

<bundles_post_ra>
// kernel: tpu_custom_call.1
= control target key start
LH: loop header
LB: loop body
LE: loop exit
PB: predicated region body
PF: predicated region fallthrough
CT: control target
= control target key end

     0   :  { %6 = vsyncpa [#allocation3], 0  ;;  %s153_s0 = inlined_call_operand.hbm [shape: f32[4,256], index: 0, kind: input, shape index: {}]   ;;  %s154_s1 = inlined_call_operand.hbm [shape: f32[4,256], index: 1, kind: output, shape index: {}]  }
   0x1   :  { %7 = vsyncpa [#allocation4], 0  ;;  %s130_s6 = smov [#allocation2]  }
   0x2   :  { %s14_s7 = sshll.u32 %s130_s6, 4  ;;  %s15_s7 = int_to_ptr.vmem [resolvable:$true] %s14_s7 }
   0x3   :  { %s94_s8 = scalar_lea.vmem %s15_s7, 128  ;;  %p99_p1 = scmp.lt.s32.totalorder %s15_s7, %s15_s7 }
   0x4   :  { %p95_p0 = scmp.ne.s32.totalorder %s15_s7, %s94_s8  ;;  %p100_p2 = scmp.lt.s32.totalorder %s94_s8, %s94_s8 }
   0x6   :  { %p101_p3 = por %p100_p2, %p99_p1 }
   0x8   :  { %p102_p4 = pnand %p101_p3, %p95_p0 }
   0xa   :  { %105 = shalt.err (!%p102_p4)
}
   0xb   :  { %17 = dma.hbm_to_vmem [thread:$0]  %s153_s0, 128, %s15_s7, [#allocation3]  }
   0xc   :  { %126 = dma.done.wait [#allocation3], 128  }
   0xd   :  { %127 = vsyncadd [#allocation3], 4294967168  ;;  %vm25_vm0 = vcmask 1043456   ;;  %v21_v0 = vld [vmem:[#allocation2] sm:$0xff]  ;;  %v131_v5 = vmov 839922192   ;;  %v35_v7 = vlaneseq }
   0xe   :  { %v23_v1 = vcombine.high %v21_v0, %v21_v0  ;;  %v26_v2 = vsel %vm25_vm0, %v21_v0, -inf  ;;  %v33_v6 = vunpack.c.l.s4 %v131_v5  ;;  %s132_s0 = smov [#allocation5]  }
   0xf   :  { %v36_v9 = vshrl.u32 %v35_v7, 7  ;;  %s69_s11 = sshll.u32 %s132_s0, 4  ;;  %s70_s11 = int_to_ptr.vmem [resolvable:$true] %s69_s11 }
  0x10   :  { %v27_v3 = vsel %vm25_vm0, %v23_v1, -inf  ;;  %v34_v8 = vunpack.c.0.s8 %v33_v6  ;;  %s106_s12 = scalar_lea.vmem %s70_s11, 128  ;;  %p111_p6 = scmp.lt.s32.totalorder %s70_s11, %s70_s11 }
  0x11   :  { %v28_v4 = vmax.f32 %v26_v2, %v27_v3  ;;  %p107_p5 = scmp.ne.s32.totalorder %s70_s11, %s106_s12  ;;  %p112_p7 = scmp.lt.s32.totalorder %s106_s12, %s106_s12 }
  0x12   :  { %v37_v10 = vsub.s32 %v34_v8, %v36_v9 }
  0x13   :  { %29 = vmax.xlane.f32.xlu0 %v28_v4  ;;  %p113_p8 = por %p112_p7, %p111_p6 }
  0x15   :  { %p114_p9 = pnand %p113_p8, %p107_p5 }
  0x9c   :  { %v30_v11 = vpop.xlane.xlu0 %29 }
  0x9d   :  { %v38_v12 = vrot.slane %v30_v11, %v37_v10 }
  0x9f   :  { %v40_v13 = vsub.f32 %v21_v0, %v38_v12 }
  0xa1   :  { %v41_v14 = vmul.f32 1.442695, %v40_v13 }
  0xa3   :  { %82 = vpow2.f32 %v41_v14 }
  0xb0   :  { %v83_v15 = vpop.eup %82 }
  0xb1   :  { %v44_v16 = vcombine.high %v83_v15, %v83_v15  ;;  %v46_v17 = vsel %vm25_vm0, %v83_v15, 0.0 }
  0xb3   :  { %v47_v18 = vsel %vm25_vm0, %v44_v16, 0.0 }
  0xb4   :  { %v48_v19 = vadd.f32 %v47_v18, %v46_v17 }
  0xb6   :  { %49 = vadd.xlane.f32.xlu0 %v48_v19 }
 0x13f   :  { %v50_v20 = vpop.xlane.xlu0 %49 }
 0x140   :  { %84 = vrcp.f32 %v50_v20 }
 0x14d   :  { %v85_v21 = vpop.eup %84 }
 0x14e   :  { %v59_v22 = vrot.slane %v85_v21, %v37_v10 }
 0x150   :  { %v61_v23 = vmul.f32 %v83_v15, %v59_v22 }
 0x152   :  { %62 = vst [vmem:[#allocation5] sm:$0xff] %v61_v23 }
 0x153   :  { %117 = shalt.err (!%p114_p9)
}
 0x154   :  { %72 = dma.vmem_to_hbm [thread:$0]  %s70_s11, 128, %s154_s1, [#allocation4]  }
 0x155   :  { %128 = dma.done.wait [#allocation4], 128  }
 0x156   :  { %129 = vsyncadd [#allocation4], 4294967168 }
 0x157   :  { %76 = vsyncpa [#allocation3], 1 }
 0x158   :  { %77 = vsyncpa [#allocation4], 1 }

</bundles_post_ra>
